<compile_context>
chip_gen: v7x
topology: tpu7x:2x2x1
jax: 0.10.0
libtpu: 0.0.40
codegen_flags: <defaults>
</compile_context>

<pallas_src>
import functools

import jax
import jax.numpy as jnp
import numpy as np
from jax.experimental import pallas as pl
from jax.experimental.pallas import tpu as pltpu


# -----------------------------------------------------------------------------
# Kernel bodies
# -----------------------------------------------------------------------------
def _fused_kernel(x_ref, w_ref, b_ref, out_ref, mean_ref, var_ref, *, cnt, eps):
    """Single-pass path: a full (N, c_blk, HW) channel slab is resident in VMEM.

    Stable two-pass mean/var over the resident slab, then the per-sample
    Bayesian affine:  out = (x - mean) * rsqrt(var + eps) * w + b.
    """
    x = x_ref[...].astype(jnp.float32)                          # (N, c_blk, HW)
    mean = jnp.sum(jnp.sum(x, axis=2, keepdims=True),
                   axis=0, keepdims=True) / cnt                 # (1, c_blk, 1)
    d = x - mean
    var = jnp.sum(jnp.sum(d * d, axis=2, keepdims=True),
                  axis=0, keepdims=True) / cnt                  # (1, c_blk, 1), biased
    inv = jax.lax.rsqrt(var + eps)
    scale = w_ref[...].astype(jnp.float32) * inv                # (N, c_blk, 1)
    out_ref[...] = (d * scale + b_ref[...].astype(jnp.float32)).astype(out_ref.dtype)
    mean_ref[...] = mean[0]                                     # (c_blk, 1)
    var_ref[...] = var[0]


def _stats_kernel(x_ref, psum_ref, pm2_ref):
    """Two-pass path, phase 1: per-block channel partials.

    Emits per-(n-block) channel sums and *centered* sum-of-squares (Chan et al.
    parallel-variance partials); the cross-block combine is done outside on a
    tiny (num_n, C) array.
    """
    x = x_ref[...].astype(jnp.float32)                          # (n_blk, c_blk, HW)
    bcnt = float(x.shape[0] * x.shape[2])
    s = jnp.sum(jnp.sum(x, axis=2, keepdims=True), axis=0, keepdims=True)
    d = x - s / bcnt
    m2 = jnp.sum(jnp.sum(d * d, axis=2, keepdims=True), axis=0, keepdims=True)
    psum_ref[...] = s                                           # (1, c_blk, 1)
    pm2_ref[...] = m2


def _apply_kernel(x_ref, scale_ref, shift_ref, out_ref):
    """Two-pass path, phase 2: one FMA/element with per-(sample, channel) scale/shift."""
    x = x_ref[...].astype(jnp.float32)                          # (n_blk, c_blk, HW)
    out_ref[...] = (x * scale_ref[...] + shift_ref[...]).astype(out_ref.dtype)


# -----------------------------------------------------------------------------
# Block-size selection (exact divisors only -> no masking anywhere)
# -----------------------------------------------------------------------------
def _c_block_options(C):
    if C % 8 != 0:
        return [C]                 # full-C block (allowed when block dim == array dim)
    return [d for d in range(8, C + 1, 8) if C % d == 0]


def _pick_c_block(C, bytes_per_channel, target_bytes, prefer_split):
    opts = _c_block_options(C)
    fitting = [d for d in opts if d * bytes_per_channel <= target_bytes]
    if not fitting:
        return opts[0]
    if prefer_split:
        # Prefer >=2 channel blocks so both v7x TensorCores get work.
        split = [d for d in fitting if C // d >= 2]
        if split:
            return max(split)
    return max(fitting)


# -----------------------------------------------------------------------------
# Wrapper
# -----------------------------------------------------------------------------
def bayes_batchnorm2d(x_nchw, params, noise_w, noise_b, *,
                      eps=1e-5, momentum=0.1,
                      fused_slab_bytes=4 * 1024 * 1024,
                      block_target_bytes=4 * 1024 * 1024,
                      vmem_limit_bytes=48 * 1024 * 1024):
    """Training-mode forward of _BayesBatchNormIMP for 4D NCHW inputs.

    Returns (out_nchw, new_running_mean, new_running_var).

    The two *_bytes knobs are per-generation tuning points: ~4 MiB tiles +
    48 MiB limit are safe on v7x (64 MiB VMEM) and already near the HBM
    roofline; v5e/v6e (128 MiB VMEM) may raise both.
    """
    N, C, H, W = x_nchw.shape
    HW = H * W
    cnt = float(N * HW)
    out_dtype = x_nchw.dtype
    itemsize = jnp.dtype(x_nchw.dtype).itemsize
    f32 = jnp.float32

    # NCHW-native view: (N, C, HW) is a free reshape — no transposes, no extra HBM pass.
    x3d = x_nchw.reshape(N, C, HW)

    # Per-sample reparameterized affine (MulExpAddFunction): tiny O(N*C) XLA op, f32.
    wpsi = params["weight_psi"].reshape(C).astype(f32)
    wmu = params["weight_mu"].reshape(C).astype(f32)
    bpsi = params["bias_psi"].reshape(C).astype(f32)
    bmu = params["bias_mu"].reshape(C).astype(f32)
    w = noise_w.reshape(N, C).astype(f32) * jnp.exp(wpsi) + wmu      # (N, C)
    b = noise_b.reshape(N, C).astype(f32) * jnp.exp(bpsi) + bmu      # (N, C)

    def _cparams(sem):
        return pltpu.CompilerParams(dimension_semantics=sem,
                                    vmem_limit_bytes=vmem_limit_bytes)

    c_min = _c_block_options(C)[0]
    fused_ok = N * c_min * HW * itemsize <= fused_slab_bytes

    if fused_ok:
        # ---- single-pass: channel slab resident, saves one full HBM read of x ----
        c_blk = _pick_c_block(C, N * HW * itemsize, fused_slab_bytes, prefer_split=True)
        num_c = C // c_blk
        w3 = w.reshape(N, C, 1)
        b3 = b.reshape(N, C, 1)
        out3d, mean2, var2 = pl.pallas_call(
            functools.partial(_fused_kernel, cnt=cnt, eps=float(eps)),
            grid=(num_c,),
            in_specs=[
                pl.BlockSpec((N, c_blk, HW), lambda c: (0, c, 0)),   # x slab
                pl.BlockSpec((N, c_blk, 1), lambda c: (0, c, 0)),    # w (per sample)
                pl.BlockSpec((N, c_blk, 1), lambda c: (0, c, 0)),    # b (per sample)
            ],
            out_specs=(
                pl.BlockSpec((N, c_blk, HW), lambda c: (0, c, 0)),   # out
                pl.BlockSpec((c_blk, 1), lambda c: (c, 0)),          # batch mean
                pl.BlockSpec((c_blk, 1), lambda c: (c, 0)),          # batch var (biased)
            ),
            out_shape=(
                jax.ShapeDtypeStruct((N, C, HW), out_dtype),
                jax.ShapeDtypeStruct((C, 1), f32),
                jax.ShapeDtypeStruct((C, 1), f32),
            ),
            compiler_params=_cparams(("parallel",)),
        )(x3d, w3, b3)
        mean = mean2[:, 0]
        var = var2[:, 0]
    else:
        # ---- two-pass streaming path for large N*HW ----
        c_blk = _pick_c_block(C, HW * itemsize, block_target_bytes, prefer_split=False)
        num_c = C // c_blk
        n_divs = [d for d in range(1, N + 1) if N % d == 0]
        n_fit = [d for d in n_divs if d * c_blk * HW * itemsize <= block_target_bytes]
        n_blk = max(n_fit) if n_fit else 1
        num_n = N // n_blk
        block_cnt = float(n_blk * HW)

        x_spec = pl.BlockSpec((n_blk, c_blk, HW), lambda c, n: (n, c, 0))
        vec_spec = pl.BlockSpec((1, c_blk, 1), lambda c, n: (n, c, 0))

        # Phase 1: per-block channel sums + centered sum-of-squares.  All grid points
        # write distinct blocks -> fully "parallel" grid; combine outside is O(num_n*C).
        psum, pm2 = pl.pallas_call(
            _stats_kernel,
            grid=(num_c, num_n),
            in_specs=[x_spec],
            out_specs=(vec_spec, vec_spec),
            out_shape=(jax.ShapeDtypeStruct((num_n, C, 1), f32),
                       jax.ShapeDtypeStruct((num_n, C, 1), f32)),
            compiler_params=_cparams(("parallel", "parallel")),
        )(x3d)

        mean = jnp.sum(psum, axis=0)[:, 0] / cnt                     # (C,)
        bmean = psum[:, :, 0] / block_cnt                            # (num_n, C)
        corr = block_cnt * jnp.sum((bmean - mean[None, :]) ** 2, axis=0)
        var = (jnp.sum(pm2, axis=0)[:, 0] + corr) / cnt              # (C,) biased

        inv = jax.lax.rsqrt(var + eps)
        scale = (w * inv[None, :]).reshape(N, C, 1)                  # (N, C, 1) f32
        shift = (b - w * inv[None, :] * mean[None, :]).reshape(N, C, 1)

        nc_spec = pl.BlockSpec((n_blk, c_blk, 1), lambda c, n: (n, c, 0))
        # Phase 2: fused normalize + Bayesian affine, one FMA per element.
        out3d = pl.pallas_call(
            _apply_kernel,
            grid=(num_c, num_n),
            in_specs=[x_spec, nc_spec, nc_spec],
            out_specs=x_spec,
            out_shape=jax.ShapeDtypeStruct((N, C, HW), out_dtype),
            compiler_params=_cparams(("parallel", "parallel")),
        )(x3d, scale, shift)

    # Functional running-stat update (PyTorch stores the *unbiased* batch variance).
    rm = params["running_mean"].reshape(C)
    rv = params["running_var"].reshape(C)
    unbias = cnt / (cnt - 1.0) if cnt > 1.0 else float("nan")
    new_rm = ((1.0 - momentum) * rm.astype(f32) + momentum * mean).astype(rm.dtype)
    new_rv = ((1.0 - momentum) * rv.astype(f32) + momentum * var * unbias).astype(rv.dtype)

    out_nchw = out3d.reshape(N, C, H, W)
    # TODO(synk): num_batches_tracked += 1 (and the momentum=None cumulative-average
    # factor) is host-side Python/long-buffer bookkeeping; kept outside the kernel.
    return out_nchw, new_rm, new_rv


# -----------------------------------------------------------------------------
# Pure-JAX reference mirroring the PyTorch forward (training mode)
# -----------------------------------------------------------------------------
def _reference(x_nchw, params, noise_w, noise_b, eps=1e-5, momentum=0.1):
    N, C, H, W = x_nchw.shape
    xf = x_nchw.astype(jnp.float32)
    mean = jnp.mean(xf, axis=(0, 2, 3))
    var = jnp.mean((xf - mean[None, :, None, None]) ** 2, axis=(0, 2, 3))
    xhat = (xf - mean[None, :, None, None]) * jax.lax.rsqrt(var[None, :, None, None] + eps)
    w = noise_w * jnp.exp(params["weight_psi"].reshape(C)) + params["weight_mu"].reshape(C)
    b = noise_b * jnp.exp(params["bias_psi"].reshape(C)) + params["bias_mu"].reshape(C)
    out = b[:, :, None, None] + w[:, :, None, None] * xhat
    cnt = N * H * W
    new_rm = (1 - momentum) * params["running_mean"].reshape(C) + momentum * mean
    new_rv = (1 - momentum) * params["running_var"].reshape(C) + momentum * var * (cnt / (cnt - 1))
    return out.astype(x_nchw.dtype), new_rm, new_rv


if __name__ == "__main__":
    N, C, H, W = 2, 4, 16, 16
    dtype = jnp.float32
    key = jax.random.PRNGKey(0)
    k_x, k_wpsi, k_bpsi, k_nw, k_nb = jax.random.split(key, 5)

    x = jax.random.normal(k_x, (N, C, H, W), dtype=dtype)

    # Deterministic parameter init matching reset_parameters():
    #   weight_mu = 1, bias_mu = 0, psi ~ U(-6, -5), running_mean = 0, running_var = 1
    params = {
        "weight_mu": jnp.ones((C,), dtype),
        "weight_psi": jax.random.uniform(k_wpsi, (C,), dtype, minval=-6.0, maxval=-5.0),
        "bias_mu": jnp.zeros((C,), dtype),
        "bias_psi": jax.random.uniform(k_bpsi, (C,), dtype, minval=-6.0, maxval=-5.0),
        "running_mean": jnp.zeros((C,), dtype),
        "running_var": jnp.ones((C,), dtype),
    }

    # Per-sample reparameterization noise (torch.randn(bs, num_features) equivalent).
    noise_w = jax.random.normal(k_nw, (N, C), dtype=dtype)
    noise_b = jax.random.normal(k_nb, (N, C), dtype=dtype)

    ref_out, ref_rm, ref_rv = _reference(x, params, noise_w, noise_b)

    # Path 1: fused single-pass kernel (channel slab fits VMEM).
    out, new_rm, new_rv = bayes_batchnorm2d(x, params, noise_w, noise_b,
                                            eps=1e-5, momentum=0.1)
    jax.block_until_ready((out, new_rm, new_rv))
    np.testing.assert_allclose(np.asarray(out), np.asarray(ref_out), atol=1e-4, rtol=1e-4)
    np.testing.assert_allclose(np.asarray(new_rm), np.asarray(ref_rm), atol=1e-5, rtol=1e-5)
    np.testing.assert_allclose(np.asarray(new_rv), np.asarray(ref_rv), atol=1e-5, rtol=1e-5)

    # Path 2: force the two-pass streaming kernels with tiny block targets so the
    # small test tensor also exercises the multi-block partial-stats combine.
    out2, rm2, rv2 = bayes_batchnorm2d(x, params, noise_w, noise_b,
                                       eps=1e-5, momentum=0.1,
                                       fused_slab_bytes=0, block_target_bytes=4096)
    jax.block_until_ready((out2, rm2, rv2))
    np.testing.assert_allclose(np.asarray(out2), np.asarray(ref_out), atol=1e-4, rtol=1e-4)
    np.testing.assert_allclose(np.asarray(rm2), np.asarray(ref_rm), atol=1e-5, rtol=1e-5)
    np.testing.assert_allclose(np.asarray(rv2), np.asarray(ref_rv), atol=1e-5, rtol=1e-5)

    print("KERNEL_OK")
</pallas_src>

<mosaic_0001>
module attributes {stable_mosaic.version = 11 : i64} {
  func.func @_fused_kernel(%arg0: i32, %arg1: memref<2x4x256xf32, #tpu.memory_space<vmem>>, %arg2: memref<2x4x1xf32, #tpu.memory_space<vmem>>, %arg3: memref<2x4x1xf32, #tpu.memory_space<vmem>>, %arg4: memref<2x4x256xf32, #tpu.memory_space<vmem>>, %arg5: memref<4x1xf32, #tpu.memory_space<vmem>>, %arg6: memref<4x1xf32, #tpu.memory_space<vmem>>) attributes {dimension_semantics = [#tpu.dimension_semantics<parallel>], iteration_bounds = array<i64: 1>, scalar_prefetch = 0 : i64, scratch_operands = 0 : i64, tpu.core_type = #tpu.core_type<tc>, window_params = [{transform_indices = @transform_0, window_bounds = array<i64: 2, 4, 256>}, {transform_indices = @transform_1, window_bounds = array<i64: 2, 4, 1>}, {transform_indices = @transform_2, window_bounds = array<i64: 2, 4, 1>}, {transform_indices = @transform_3, window_bounds = array<i64: 2, 4, 256>}, {transform_indices = @transform_4, window_bounds = array<i64: 4, 1>}, {transform_indices = @transform_5, window_bounds = array<i64: 4, 1>}]} {
    %c0 = arith.constant 0 : index
    %c0_0 = arith.constant 0 : index
    %c0_1 = arith.constant 0 : index
    %0 = vector.load %arg1[%c0, %c0_0, %c0_1] : memref<2x4x256xf32, #tpu.memory_space<vmem>>, vector<2x4x256xf32>
    %cst = arith.constant dense<0.000000e+00> : vector<2x4xf32>
    %1 = vector.multi_reduction <add>, %0, %cst [2] : vector<2x4x256xf32> to vector<2x4xf32>
    %2 = vector.shape_cast %1 : vector<2x4xf32> to vector<2x4x1xf32>
    %cst_2 = arith.constant dense<0.000000e+00> : vector<4x1xf32>
    %3 = vector.multi_reduction <add>, %2, %cst_2 [0] : vector<2x4x1xf32> to vector<4x1xf32>
    %4 = vector.shape_cast %3 : vector<4x1xf32> to vector<1x4x1xf32>
    %cst_3 = arith.constant 5.120000e+02 : f32
    %5 = vector.broadcast %cst_3 : f32 to vector<1x4x1xf32>
    %6 = arith.divf %4, %5 : vector<1x4x1xf32>
    %7 = vector.broadcast %6 : vector<1x4x1xf32> to vector<2x4x256xf32>
    %8 = arith.subf %0, %7 : vector<2x4x256xf32>
    %9 = arith.mulf %8, %8 : vector<2x4x256xf32>
    %cst_4 = arith.constant dense<0.000000e+00> : vector<2x4xf32>
    %10 = vector.multi_reduction <add>, %9, %cst_4 [2] : vector<2x4x256xf32> to vector<2x4xf32>
    %11 = vector.shape_cast %10 : vector<2x4xf32> to vector<2x4x1xf32>
    %cst_5 = arith.constant dense<0.000000e+00> : vector<4x1xf32>
    %12 = vector.multi_reduction <add>, %11, %cst_5 [0] : vector<2x4x1xf32> to vector<4x1xf32>
    %13 = vector.shape_cast %12 : vector<4x1xf32> to vector<1x4x1xf32>
    %cst_6 = arith.constant 5.120000e+02 : f32
    %14 = vector.broadcast %cst_6 : f32 to vector<1x4x1xf32>
    %15 = arith.divf %13, %14 : vector<1x4x1xf32>
    %cst_7 = arith.constant 9.99999974E-6 : f32
    %16 = vector.broadcast %cst_7 : f32 to vector<1x4x1xf32>
    %17 = arith.addf %15, %16 : vector<1x4x1xf32>
    %18 = math.rsqrt %17 : vector<1x4x1xf32>
    %c0_8 = arith.constant 0 : index
    %c0_9 = arith.constant 0 : index
    %c0_10 = arith.constant 0 : index
    %19 = vector.load %arg2[%c0_8, %c0_9, %c0_10] : memref<2x4x1xf32, #tpu.memory_space<vmem>>, vector<2x4x1xf32>
    %20 = vector.broadcast %18 : vector<1x4x1xf32> to vector<2x4x1xf32>
    %21 = arith.mulf %19, %20 : vector<2x4x1xf32>
    %22 = vector.broadcast %21 : vector<2x4x1xf32> to vector<2x4x256xf32>
    %23 = arith.mulf %8, %22 : vector<2x4x256xf32>
    %c0_11 = arith.constant 0 : index
    %c0_12 = arith.constant 0 : index
    %c0_13 = arith.constant 0 : index
    %24 = vector.load %arg3[%c0_11, %c0_12, %c0_13] : memref<2x4x1xf32, #tpu.memory_space<vmem>>, vector<2x4x1xf32>
    %25 = vector.broadcast %24 : vector<2x4x1xf32> to vector<2x4x256xf32>
    %26 = arith.addf %23, %25 : vector<2x4x256xf32>
    %c0_14 = arith.constant 0 : index
    %c0_15 = arith.constant 0 : index
    %c0_16 = arith.constant 0 : index
    %27 = vector.load %arg4[%c0_14, %c0_15, %c0_16] : memref<2x4x256xf32, #tpu.memory_space<vmem>>, vector<2x4x256xf32>
    tpu.vector_store %arg4[%c0_14, %c0_15, %c0_16], %26 {strides = array<i32>} : memref<2x4x256xf32, #tpu.memory_space<vmem>>, vector<2x4x256xf32>,
    %28 = vector.shape_cast %6 : vector<1x4x1xf32> to vector<4x1xf32>
    %c0_17 = arith.constant 0 : index
    %c0_18 = arith.constant 0 : index
    %29 = vector.load %arg5[%c0_17, %c0_18] : memref<4x1xf32, #tpu.memory_space<vmem>>, vector<4x1xf32>
    tpu.vector_store %arg5[%c0_17, %c0_18], %28 {strides = array<i32>} : memref<4x1xf32, #tpu.memory_space<vmem>>, vector<4x1xf32>,
    %30 = vector.shape_cast %15 : vector<1x4x1xf32> to vector<4x1xf32>
    %c0_19 = arith.constant 0 : index
    %c0_20 = arith.constant 0 : index
    %31 = vector.load %arg6[%c0_19, %c0_20] : memref<4x1xf32, #tpu.memory_space<vmem>>, vector<4x1xf32>
    tpu.vector_store %arg6[%c0_19, %c0_20], %30 {strides = array<i32>} : memref<4x1xf32, #tpu.memory_space<vmem>>, vector<4x1xf32>,
    return
  }
  func.func @transform_0(%arg0: i32) -> (i32, i32, i32) {
    %c0_i32 = arith.constant 0 : i32
    %c0_i32_0 = arith.constant 0 : i32
    %c0_i32_1 = arith.constant 0 : i32
    return %c0_i32, %arg0, %c0_i32_0 : i32, i32, i32
  }
  func.func @transform_1(%arg0: i32) -> (i32, i32, i32) {
    %c0_i32 = arith.constant 0 : i32
    %c0_i32_0 = arith.constant 0 : i32
    %c0_i32_1 = arith.constant 0 : i32
    return %c0_i32, %arg0, %c0_i32_0 : i32, i32, i32
  }
  func.func @transform_2(%arg0: i32) -> (i32, i32, i32) {
    %c0_i32 = arith.constant 0 : i32
    %c0_i32_0 = arith.constant 0 : i32
    %c0_i32_1 = arith.constant 0 : i32
    return %c0_i32, %arg0, %c0_i32_0 : i32, i32, i32
  }
  func.func @transform_3(%arg0: i32) -> (i32, i32, i32) {
    %c0_i32 = arith.constant 0 : i32
    %c0_i32_0 = arith.constant 0 : i32
    %c0_i32_1 = arith.constant 0 : i32
    return %c0_i32, %arg0, %c0_i32_0 : i32, i32, i32
  }
  func.func @transform_4(%arg0: i32) -> (i32, i32) {
    %c0_i32 = arith.constant 0 : i32
    %c0_i32_0 = arith.constant 0 : i32
    return %arg0, %c0_i32 : i32, i32
  }
  func.func @transform_5(%arg0: i32) -> (i32, i32) {
    %c0_i32 = arith.constant 0 : i32
    %c0_i32_0 = arith.constant 0 : i32
    return %arg0, %c0_i32 : i32, i32
  }
}

</mosaic_0001>

<bundles_post_ra>
// kernel: tpu_custom_call.1
= control target key start
LH: loop header
LB: loop body
LE: loop exit
PB: predicated region body
PF: predicated region fallthrough
CT: control target
= control target key end

     0   :  { %vm26_vm0 = vcmask 1043456   ;;  %s284_s0 = inlined_call_operand.vmem [shape: f32[2,4,256], index: 0, kind: input, shape index: {}]   ;;  %s285_s1 = inlined_call_operand.vmem [shape: f32[2,4,1], index: 1, kind: input, shape index: {}]   ;;  %s286_s2 = inlined_call_operand.vmem [shape: f32[2,4,1], index: 2, kind: input, shape index: {}]   ;;  %s287_s3 = inlined_call_operand.hbm [shape: f32[2,4,256], index: 3, kind: output, shape index: {0}]   ;;  %s288_s4 = inlined_call_operand.vmem [shape: f32[4,1], index: 4, kind: output, shape index: {1}]   ;;  %s289_s5 = inlined_call_operand.vmem [shape: f32[4,1], index: 5, kind: output, shape index: {2}]  }
   0x1   :  { %v18_v0 = vld [vmem:[%s284_s0] sm:$0xff]  ;;  %v19_v1 = vld [vmem:[%s284_s0 + $0x8] sm:$0xff] }
   0x2   :  { %11 = vsyncpa [#allocation3], 0  ;;  %v22_v2 = vcombine.high %v18_v0, %v18_v0  ;;  %v27_v3 = vsel %vm26_vm0, %v18_v0, 0.0  ;;  %v23_v4 = vcombine.high %v19_v1, %v19_v1  ;;  %v32_v6 = vsel %vm26_vm0, %v19_v1, 0.0  ;;  %v107_v35 = vld [vmem:[%s286_s2] sm:$0xf] }
   0x3   :  { %v199_v10 = vmov 839922192   ;;  %v46_v12 = vlaneseq  ;;  %vm137_vm1 = vcmask 3072   ;;  %v200_v36 = vmov 0   ;;  %v78_v44 = vld [vmem:[%s285_s1 + $0x4] sm:$0xf] }
   0x4   :  { %v28_v5 = vsel %vm26_vm0, %v22_v2, 0.0  ;;  %v33_v7 = vsel %vm26_vm0, %v23_v4, 0.0  ;;  %v44_v11 = vunpack.c.l.s4 %v199_v10  ;;  %170 = vset.pattern.permute.xlu1 %v200_v36  ;;  %169 = vset.pattern.permute.xlu0 %v200_v36  ;;  %v77_v45 = vld [vmem:[%s285_s1] sm:$0xf]  ;;  %v108_v49 = vld [vmem:[%s286_s2 + $0x4] sm:$0xf] }
   0x5   :  { %v29_v8 = vadd.f32 %v28_v5, %v27_v3  ;;  %v34_v9 = vadd.f32 %v33_v7, %v32_v6  ;;  %v47_v15 = vshrl.u32 %v46_v12, 7 }
   0x6   :  { %v45_v14 = vunpack.c.0.s8 %v44_v11 }
   0x7   :  { %30 = vadd.xlane.f32.xlu0 %v29_v8 }
   0x8   :  { %v48_v19 = vsub.s32 %v45_v14, %v47_v15 }
   0xb   :  { %35 = vadd.xlane.f32.xlu0 %v34_v9 }
  0x94   :  { %v31_v13 = vpop.xlane.xlu0 %30 }
  0x95   :  { %v37_v17 = vsel %vm26_vm0, %v31_v13, 0.0 }
  0x98   :  { %v36_v16 = vpop.xlane.xlu0 %35 }
  0x99   :  { %v38_v18 = vsel %vm26_vm0, %v36_v16, 0.0 }
  0x9a   :  { %v39_v20 = vadd.f32 %v38_v18, %v37_v17 }
  0x9c   :  { %v41_v21 = vmul.f32 0.001953125, %v39_v20 }
  0x9e   :  { %v49_v22 = vrot.slane %v41_v21, %v48_v19  ;;  %138 = vst.msk [vmem:[%s288_s4] sm:$0xf] %vm137_vm1, %v41_v21 }
  0xa0   :  { %v52_v23 = vsub.f32 %v19_v1, %v49_v22  ;;  %v51_v24 = vsub.f32 %v18_v0, %v49_v22 }
  0xa2   :  { %v53_v25 = vmul.f32 %v51_v24, %v51_v24  ;;  %v54_v26 = vmul.f32 %v52_v23, %v52_v23 }
  0xa4   :  { %v57_v27 = vcombine.high %v53_v25, %v53_v25  ;;  %v58_v28 = vcombine.high %v54_v26, %v54_v26  ;;  %v61_v29 = vsel %vm26_vm0, %v53_v25, 0.0  ;;  %v66_v33 = vsel %vm26_vm0, %v54_v26, 0.0 }
  0xa6   :  { %v62_v30 = vsel %vm26_vm0, %v57_v27, 0.0  ;;  %v67_v32 = vsel %vm26_vm0, %v58_v28, 0.0 }
  0xa7   :  { %v63_v31 = vadd.f32 %v62_v30, %v61_v29  ;;  %v68_v34 = vadd.f32 %v67_v32, %v66_v33 }
  0xa9   :  { %64 = vadd.xlane.f32.xlu1 %v63_v31 }
  0xad   :  { %69 = vadd.xlane.f32.xlu1 %v68_v34 }
  0xbe   :  { %111 = vperm.xlu1 %170, %v107_v35  }
 0x136   :  { %v65_v37 = vpop.xlane.xlu1 %64 }
 0x137   :  { %v71_v39 = vsel %vm26_vm0, %v65_v37, 0.0 }
 0x13a   :  { %v70_v38 = vpop.xlane.xlu1 %69 }
 0x13b   :  { %v72_v40 = vsel %vm26_vm0, %v70_v38, 0.0 }
 0x13c   :  { %v73_v41 = vadd.f32 %v72_v40, %v71_v39 }
 0x13e   :  { %v74_v42 = vmul.f32 0.001953125, %v73_v41  ;;  %v112_v50 = vpop.permute.xlu1 %111 }
 0x13f   :  { %v123_v55 = vrot.slane %v112_v50, %v48_v19 }
 0x140   :  { %v75_v43 = vadd.f32 1e-05, %v74_v42  ;;  %139 = vst.msk [vmem:[%s289_s5] sm:$0xf] %vm137_vm1, %v74_v42  ;;  %s201_s5 = smov [#allocation2]  }
 0x141   :  { %s145_s7 = sshll.u32 %s201_s5, 4  ;;  %s146_s7 = int_to_ptr.vmem [resolvable:$true] %s145_s7 }
 0x142   :  { %173 = vrsqrt.f32 %v75_v43  ;;  %s175_s1 = scalar_lea.vmem %s146_s7, 256  ;;  %p180_p1 = scmp.lt.s32.totalorder %s146_s7, %s146_s7 }
 0x143   :  { %p176_p0 = scmp.ne.s32.totalorder %s146_s7, %s175_s1  ;;  %p181_p2 = scmp.lt.s32.totalorder %s175_s1, %s175_s1 }
 0x145   :  { %p182_p3 = por %p181_p2, %p180_p1 }
 0x147   :  { %p183_p4 = pnand %p182_p3, %p176_p0 }
 0x14c   :  { %v174_v46 = vpop.eup %173 }
 0x14d   :  { %v80_v47 = vmul.f32 %v174_v46, %v78_v44  ;;  %v79_v48 = vmul.f32 %v174_v46, %v77_v45 }
 0x14f   :  { %87 = vperm.xlu1 %170, %v80_v47   ;;  %83 = vperm.xlu0 %169, %v79_v48  }
 0x153   :  { %115 = vperm.xlu1 %170, %v108_v49  }
 0x1ce   :  { %v84_v51 = vpop.permute.xlu0 %83  ;;  %v88_v52 = vpop.permute.xlu1 %87 }
 0x1cf   :  { %v95_v53 = vrot.slane %v84_v51, %v48_v19  ;;  %v102_v54 = vrot.slane %v88_v52, %v48_v19 }
 0x1d1   :  { %v105_v56 = vmul.f32 %v95_v53, %v51_v24  ;;  %v106_v59 = vmul.f32 %v102_v54, %v52_v23 }
 0x1d2   :  { %v116_v57 = vpop.permute.xlu1 %115 }
 0x1d3   :  { %v133_v58 = vadd.f32 %v123_v55, %v105_v56  ;;  %v130_v60 = vrot.slane %v116_v57, %v48_v19 }
 0x1d5   :  { %135 = vst [vmem:[#allocation2] sm:$0xff] %v133_v58  ;;  %v134_v61 = vadd.f32 %v130_v60, %v106_v59 }
 0x1d7   :  { %136 = vst [vmem:[#allocation2 + $0x8] sm:$0xff] %v134_v61 }
 0x1d8   :  { %186 = shalt.err (!%p183_p4)
}
 0x1d9   :  { %s187_s9 = scalar_lea.hbm %s287_s3, 256 }
 0x1da   :  { %p188_p5 = scmp.ne.s32.totalorder %s287_s3, %s187_s9  ;;  %p191_p6 = scmp.lt.u32.totalorder %s187_s9, %s287_s3 }
 0x1dc   :  { %p193_p7 = pnand %p191_p6, %p188_p5 }
 0x1de   :  { %196 = shalt.err (!%p193_p7)
}
 0x1df   :  { %s202_s14 = smov 128   ;;  %s203_s15 = smov 8  }
 0x1e0   :  { %151 = dma.vmem_to_hbm [thread:$0]  %s146_s7, 256, %s287_s3, [#allocation3], %s202_s14, %s202_s14, %s203_s15  }
 0x1e1   :  { %197 = dma.done.wait [#allocation3], 256  }
 0x1e2   :  { %198 = vsyncadd [#allocation3], 4294967040 }
 0x1e3   :  { %163 = vsyncpa [#allocation3], 1 }

</bundles_post_ra>
